<compile_context>
chip_gen: v5e
topology: v5e:2x2
jax: 0.10.0
libtpu: 0.0.40
codegen_flags: <defaults>
</compile_context>

<pallas_src>
import functools
import numpy as np
import jax
import jax.numpy as jnp
from jax.experimental import pallas as pl
from jax.experimental.pallas import tpu as pltpu

MA_KERNEL = 25  # DLinear moving-average kernel size


# ----------------------- host-side constant linear operators -----------------
def make_pool_matrix(L, d):
    """AvgPool1d(kernel=d, stride=d) over length L as a [L, L//d] matrix."""
    Ld = L // d
    m = np.zeros((L, Ld), np.float32)
    for i in range(Ld):
        m[i * d:(i + 1) * d, i] = 1.0 / d
    return m


def make_moving_avg_matrix(Ld, kernel=MA_KERNEL):
    """Moving average (stride 1, replicate padding) as a [Ld, Ld] matrix."""
    pad = (kernel - 1) // 2
    m = np.zeros((Ld, Ld), np.float32)
    for i in range(Ld):
        for k in range(i - pad, i + pad + 1):
            j = min(max(k, 0), Ld - 1)
            m[j, i] += 1.0 / kernel
    return m


@functools.lru_cache(maxsize=None)
def _branch_constant_ops(L, d, kernel=MA_KERNEL):
    """Cached (pool, moving_avg) constant matrices for one branch."""
    Ld = L // d
    return make_pool_matrix(L, d), make_moving_avg_matrix(Ld, kernel)


def compose_operator(params, cfg, downsample_list):
    """Fold all branches into a single [L, P] matrix and [1, P] bias.

    Composition uses jnp so it stays differentiable w.r.t. the DLinear
    weights and fuses under jit; the pool/MA matrices are cached numpy
    constants.
    """
    L, P = cfg['input_len'], cfg['output_len']
    W = jnp.zeros((L, P), jnp.float32)
    b = jnp.zeros((P,), jnp.float32)
    for d, p in zip(downsample_list, params):
        pool_m, ma_m = _branch_constant_ops(L, d)
        Ld = L // d
        seas_op = jnp.asarray(np.eye(Ld, dtype=np.float32) - ma_m)   # (I - ma)
        ma = jnp.asarray(ma_m)
        pool = jnp.asarray(pool_m)
        ws_t = jnp.transpose(p['ws']).astype(jnp.float32)            # [Ld, P]
        wt_t = jnp.transpose(p['wt']).astype(jnp.float32)            # [Ld, P]
        proj = seas_op @ ws_t + ma @ wt_t                            # [Ld, P]
        W = W + pool @ proj                                          # [L, P]
        b = b + p['bs'] + p['bt']
    return W, b[None, :]                                             # [L,P], [1,P]


# ----------------------------------- kernel ----------------------------------
def _multi_res_kernel(x_ref, w_ref, b_ref, o_ref):
    # Single MXU matmul (default precision) + VPU bias add, all in f32.
    o_ref[...] = (jnp.dot(x_ref[...], w_ref[...],
                          preferred_element_type=jnp.float32)
                  + b_ref[...])


# --------------------------------- wrapper ------------------------------------
def init_params(key, cfg, downsample_list):
    """Deterministic synthetic init matching nn.Linear shapes of each Dlinear."""
    L, P = cfg['input_len'], cfg['output_len']
    params = []
    for d in downsample_list:
        Ld = L // d
        bound = 1.0 / np.sqrt(Ld)
        key, k1, k2, k3, k4 = jax.random.split(key, 5)
        params.append(dict(
            ws=jax.random.uniform(k1, (P, Ld), jnp.float32, -bound, bound),
            bs=jax.random.uniform(k2, (P,), jnp.float32, -bound, bound),
            wt=jax.random.uniform(k3, (P, Ld), jnp.float32, -bound, bound),
            bt=jax.random.uniform(k4, (P,), jnp.float32, -bound, bound),
        ))
    return params


def multi_res_pallas(x, params, cfg, downsample_list):
    B, L, C = x.shape
    P = cfg['output_len']
    assert L == cfg['input_len'] and P == L, "y += xx requires pred_len == seq_len"

    # Fold the whole multi-resolution ensemble into one [L, P] operator + bias.
    W, bias = compose_operator(params, cfg, downsample_list)

    # [B, L, C] -> [B*C, L]  (time on lanes, batch*channel on sublanes)
    x2 = jnp.transpose(x, (0, 2, 1)).reshape(B * C, L).astype(jnp.float32)

    # Row tiling: parallel grid over rows (shards across v7x's 2 TCs when B*C
    # is large); tiny at this test size (one 8-row block).
    R = B * C
    TILE_R = min(512, ((R + 7) // 8) * 8)
    Rp = -(-R // TILE_R) * TILE_R
    if Rp != R:
        x2 = jnp.pad(x2, ((0, Rp - R), (0, 0)))

    out2 = pl.pallas_call(
        _multi_res_kernel,
        out_shape=jax.ShapeDtypeStruct((Rp, P), jnp.float32),
        grid=(Rp // TILE_R,),
        in_specs=[pl.BlockSpec((TILE_R, L), lambda i: (i, 0)),
                  pl.BlockSpec((L, P), lambda i: (0, 0)),
                  pl.BlockSpec((1, P), lambda i: (0, 0))],
        out_specs=pl.BlockSpec((TILE_R, P), lambda i: (i, 0)),
        compiler_params=pltpu.CompilerParams(
            dimension_semantics=("parallel",)),
    )(x2, W, bias)

    out2 = out2[:R]
    # [B*C, P] -> [B, P, C]  (matches PyTorch output [Batch, pred_len, Channel])
    return jnp.transpose(out2.reshape(B, C, P), (0, 2, 1))


# ----------------------------- numpy reference --------------------------------
def multi_res_reference(x, params, cfg, downsample_list):
    x = np.asarray(x, np.float64)
    B, L, C = x.shape
    pad = (MA_KERNEL - 1) // 2
    y = np.zeros((B, L, C), np.float64)
    for d, p in zip(downsample_list, params):
        Ld = L // d
        xx = x[:, -cfg['input_len'] * d:, :]                    # clamps to full seq
        xt = np.transpose(xx, (0, 2, 1))                        # [B, C, L]
        pooled = xt[:, :, :Ld * d].reshape(B, C, Ld, d).mean(-1)  # AvgPool1d(d)
        xx = np.transpose(pooled, (0, 2, 1))                    # [B, Ld, C]
        front = np.repeat(xx[:, :1, :], pad, axis=1)
        end = np.repeat(xx[:, -1:, :], pad, axis=1)
        padded = np.concatenate([front, xx, end], axis=1)
        trend = np.stack([padded[:, i:i + MA_KERNEL, :].mean(1) for i in range(Ld)],
                         axis=1)
        seasonal = xx - trend
        ws, bs = np.asarray(p['ws'], np.float64), np.asarray(p['bs'], np.float64)
        wt, bt = np.asarray(p['wt'], np.float64), np.asarray(p['bt'], np.float64)
        s_out = np.einsum('bcl,pl->bcp', np.transpose(seasonal, (0, 2, 1)), ws) + bs
        t_out = np.einsum('bcl,pl->bcp', np.transpose(trend, (0, 2, 1)), wt) + bt
        y += np.transpose(s_out + t_out, (0, 2, 1))
    return y


if __name__ == "__main__":
    cfg = {'input_len': 28, 'output_len': 28, 'in_var': 4}
    downsample_list = [1, 2, 4, 8, 14]
    B = 2

    key = jax.random.PRNGKey(0)
    key, xkey, pkey = jax.random.split(key, 3)
    x = jax.random.normal(xkey, (B, cfg['input_len'], cfg['in_var']), jnp.float32)
    params = init_params(pkey, cfg, downsample_list)

    out = multi_res_pallas(x, params, cfg, downsample_list)
    out = jax.block_until_ready(out)

    ref = multi_res_reference(np.asarray(x), params, cfg, downsample_list)
    np.testing.assert_allclose(np.asarray(out), ref, rtol=1e-2, atol=1e-2)
    print("KERNEL_OK")
</pallas_src>

<mosaic_0001>
module attributes {stable_mosaic.version = 11 : i64} {
  func.func @_multi_res_kernel(%arg0: i32, %arg1: memref<8x28xf32, #tpu.memory_space<vmem>>, %arg2: memref<28x28xf32, #tpu.memory_space<vmem>>, %arg3: memref<1x28xf32, #tpu.memory_space<vmem>>, %arg4: memref<8x28xf32, #tpu.memory_space<vmem>>) attributes {dimension_semantics = [#tpu.dimension_semantics<parallel>], iteration_bounds = array<i64: 1>, scalar_prefetch = 0 : i64, scratch_operands = 0 : i64, tpu.core_type = #tpu.core_type<tc>, window_params = [{transform_indices = @transform_0, window_bounds = array<i64: 8, 28>}, {pipeline_mode = #tpu.pipeline_mode<synchronous>, transform_indices = @transform_1, window_bounds = array<i64: 28, 28>}, {pipeline_mode = #tpu.pipeline_mode<synchronous>, transform_indices = @transform_2, window_bounds = array<i64: 1, 28>}, {transform_indices = @transform_3, window_bounds = array<i64: 8, 28>}]} {
    %c0 = arith.constant 0 : index
    %c0_0 = arith.constant 0 : index
    %0 = vector.load %arg1[%c0, %c0_0] : memref<8x28xf32, #tpu.memory_space<vmem>>, vector<8x28xf32>
    %c0_1 = arith.constant 0 : index
    %c0_2 = arith.constant 0 : index
    %1 = vector.load %arg2[%c0_1, %c0_2] : memref<28x28xf32, #tpu.memory_space<vmem>>, vector<28x28xf32>
    %cst = arith.constant dense<0.000000e+00> : vector<8x28xf32>
    %2 = tpu.matmul %0, %1, %cst {dimension_numbers = #tpu.dot_dimension_numbers<[1], [0], [0], [1], [0, 0, 1, 1], [], []>} : vector<8x28xf32>, vector<28x28xf32>, vector<8x28xf32> -> vector<8x28xf32>
    %c0_3 = arith.constant 0 : index
    %c0_4 = arith.constant 0 : index
    %3 = vector.load %arg3[%c0_3, %c0_4] : memref<1x28xf32, #tpu.memory_space<vmem>>, vector<1x28xf32>
    %4 = vector.broadcast %3 : vector<1x28xf32> to vector<8x28xf32>
    %5 = arith.addf %2, %4 : vector<8x28xf32>
    %c0_5 = arith.constant 0 : index
    %c0_6 = arith.constant 0 : index
    %6 = vector.load %arg4[%c0_5, %c0_6] : memref<8x28xf32, #tpu.memory_space<vmem>>, vector<8x28xf32>
    tpu.vector_store %arg4[%c0_5, %c0_6], %5 {strides = array<i32>} : memref<8x28xf32, #tpu.memory_space<vmem>>, vector<8x28xf32>,
    return
  }
  func.func @transform_0(%arg0: i32) -> (i32, i32) {
    %c0_i32 = arith.constant 0 : i32
    %c0_i32_0 = arith.constant 0 : i32
    return %arg0, %c0_i32 : i32, i32
  }
  func.func @transform_1(%arg0: i32) -> (i32, i32) {
    %c0_i32 = arith.constant 0 : i32
    %c0_i32_0 = arith.constant 0 : i32
    %c0_i32_1 = arith.constant 0 : i32
    return %c0_i32, %c0_i32_0 : i32, i32
  }
  func.func @transform_2(%arg0: i32) -> (i32, i32) {
    %c0_i32 = arith.constant 0 : i32
    %c0_i32_0 = arith.constant 0 : i32
    %c0_i32_1 = arith.constant 0 : i32
    return %c0_i32, %c0_i32_0 : i32, i32
  }
  func.func @transform_3(%arg0: i32) -> (i32, i32) {
    %c0_i32 = arith.constant 0 : i32
    %c0_i32_0 = arith.constant 0 : i32
    return %arg0, %c0_i32 : i32, i32
  }
}

</mosaic_0001>

<bundles_post_ra>
// kernel: tpu_custom_call.1
= control target key start
LH: loop header
LB: loop body
LE: loop exit
PB: predicated region body
PF: predicated region fallthrough
CT: control target
= control target key end

     0   :  { %8 = vsyncpa [#allocation3], 0  ;;  %s224_s0 = inlined_call_operand.hbm [shape: f32[8,28], index: 0, kind: input, shape index: {}]   ;;  %s225_s1 = inlined_call_operand.hbm [shape: f32[28,28], index: 1, kind: input, shape index: {}]   ;;  %s226_s2 = inlined_call_operand.vmem [shape: f32[1,28], index: 2, kind: input, shape index: {}]   ;;  %s227_s3 = inlined_call_operand.hbm [shape: f32[8,28], index: 3, kind: output, shape index: {}]  }
   0x1   :  { %9 = vsyncpa [#allocation6], 0 }
   0x2   :  { %10 = vsyncpa [#allocation4], 0  ;;  %s16_s14 = sshll.u32 %s224_s0, 4  ;;  %s187_s15 = smov [#allocation2]   ;;  %s17_s14 = int_to_ptr.hbm [resolvable:$true] %s16_s14 }
   0x3   :  { %s18_s16 = sshll.u32 %s187_s15, 4  ;;  %s26_s19 = sshll.u32 %s225_s1, 4  ;;  %s19_s16 = int_to_ptr.vmem [resolvable:$true] %s18_s16  ;;  %s27_s19 = int_to_ptr.hbm [resolvable:$true] %s26_s19 }
   0x4   :  { %21 = dma.hbm_to_vmem [thread:$0]  %s17_s14, 128, %s19_s16, [#allocation3]  }
   0x5   :  { %s188_s20 = smov [#allocation5]   ;;  %s189_s22 = smov 128  }
   0x6   :  { %s28_s21 = sshll.u32 %s188_s20, 4  ;;  %s190_s23 = smov 8   ;;  %s29_s21 = int_to_ptr.vmem [resolvable:$true] %s28_s21 }
   0x7   :  { %34 = dma.hbm_to_vmem [thread:$0]  %s27_s19, 512, %s29_s21, [#allocation6], %s189_s22, %s189_s22, %s190_s23  }
   0x8   :  { %181 = dma.done.wait [#allocation3], 128  }
   0x9   :  { %182 = vsyncadd [#allocation3], 4294967168 }
   0xa   :  { %183 = dma.done.wait [#allocation6], 512  }
   0xb   :  { %184 = vsyncadd [#allocation6], 4294966784  ;;  %vm58_vm0 = vcmask 1043456   ;;  %v49_v0 = vld [vmem:[#allocation5 + $0x18] sm:$0xf]  ;;  %v48_v1 = vld [vmem:[#allocation5 + $0x10] sm:$0xff] }
   0xc   :  { %101 = vmatpush.msk.msra.mxu0 %vm58_vm0, %v49_v0  ;;  %v47_v2 = vld [vmem:[#allocation5 + $0x8] sm:$0xff]  ;;  %v46_v3 = vld [vmem:[#allocation5] sm:$0xff]  ;;  %v45_v4 = vld [vmem:[#allocation2] sm:$0xff]  ;;  %vm54_vm1 = vcmask 228352   ;;  %s191_s24 = smov [#allocation7]   ;;  %s90_s28 = sshll.u32 %s227_s3, 4  ;;  %s91_s28 = int_to_ptr.hbm [resolvable:$true] %s90_s28 }
   0xd   :  { %v108_v5 = vld [vmem:[%s226_s2] ss:$0 sm:$0xff]  ;;  %s88_s25 = sshll.u32 %s191_s24, 4  ;;  %s89_s25 = int_to_ptr.vmem [resolvable:$true] %s88_s25 }
   0xe   :  { %75 = vmatpush.msra.mxu0 %v48_v1 }
  0x10   :  { %76 = vmatpush.msra.mxu0 %v47_v2 }
  0x12   :  { %77 = vmatpush.msra.mxu0 %v46_v3 }
  0x13   :  { %102 = vmatmul.msk.f32.vlgmr.msra.gmra.mxu0 %vm54_vm1, %v45_v4 }
  0x90   :  { %v79_v6 = vpop.f32.mrf.mxu0 }
  0x91   :  { %v80_v7 = vadd.f32 %v108_v5, %v79_v6 }
  0x93   :  { %82 = vst.msk [vmem:[#allocation7] sm:$0xff] %vm54_vm1, %v80_v7 }
  0x94   :  { %93 = dma.vmem_to_hbm [thread:$0]  %s89_s25, 128, %s91_s28, [#allocation4]  }
  0x95   :  { %185 = dma.done.wait [#allocation4], 128  }
  0x96   :  { %186 = vsyncadd [#allocation4], 4294967168 }
  0x97   :  { %98 = vsyncpa [#allocation3], 1 }
  0x98   :  { %99 = vsyncpa [#allocation6], 1 }
  0x99   :  { %100 = vsyncpa [#allocation4], 1 }

</bundles_post_ra>
